<compile_context>
chip_gen: v7x
topology: tpu7x:2x2x1
jax: 0.10.0
libtpu: 0.0.40
codegen_flags: <defaults>
</compile_context>

<pallas_src>
import functools
import math

import jax
import jax.numpy as jnp
from jax.experimental import pallas as pl
from jax.experimental.pallas import tpu as pltpu


def _round_up(v, m):
    return ((v + m - 1) // m) * m


def _pick_tile(dim_pad, unit, cap):
    """Largest `unit`-multiple divisor of dim_pad that is <= cap."""
    best = unit
    t = unit
    limit = min(dim_pad, cap)
    while t <= limit:
        if dim_pad % t == 0:
            best = t
        t += unit
    return best


# --------------------------------------------------------------------------
# Kernels
# --------------------------------------------------------------------------

def _rnncell_acc_kernel(lhs_ref, w_ref, b_ref, o_ref, acc_ref, *, nonlinearity):
    """One (tm, tn) output tile; grid axis 2 accumulates over K tiles."""
    k = pl.program_id(2)

    @pl.when(k == 0)
    def _():
        # Fold the bias into the accumulator init (saves a full-tile VPU add).
        acc_ref[...] = jnp.broadcast_to(b_ref[...], acc_ref.shape)

    # Single fused MXU matmul per K step, f32 accumulation regardless of the
    # operand dtype (operands are typically bf16).
    acc_ref[...] += jnp.dot(
        lhs_ref[...], w_ref[...], preferred_element_type=jnp.float32
    )

    @pl.when(k == pl.num_programs(2) - 1)
    def _():
        acc = acc_ref[...]
        acc = jnp.tanh(acc) if nonlinearity == "tanh" else jnp.maximum(acc, 0.0)
        o_ref[...] = acc.astype(o_ref.dtype)


def _rnncell_single_k_kernel(lhs_ref, w_ref, b_ref, o_ref, *, nonlinearity):
    """Single K-step fast path: no f32 scratch, direct compute + epilogue."""
    acc = jnp.dot(lhs_ref[...], w_ref[...], preferred_element_type=jnp.float32)
    acc = acc + b_ref[...]
    acc = jnp.tanh(acc) if nonlinearity == "tanh" else jnp.maximum(acc, 0.0)
    o_ref[...] = acc.astype(o_ref.dtype)


# --------------------------------------------------------------------------
# Launcher
# --------------------------------------------------------------------------

def _fused_linear_act(lhs, w_p, b_p, *, hidden_size, nonlinearity, out_dtype,
                      tm_cap=256, tk_cap=1024, tn_cap=512):
    """act(lhs @ w_p + b_p)[:B, :H] with a tiled (B, H[, K]) grid.

    lhs:  (B, K)        compute dtype (unpadded; padded here -- activations only)
    w_p:  (K_pad, H_pad) compute dtype, pre-padded in prepare_rnn_cell_params
    b_p:  (1, H_pad)     f32, pre-padded
    """
    B, K = lhs.shape
    K_pad, H_pad = w_p.shape
    assert K <= K_pad

    B_pad = _round_up(B, 8)
    tm = _pick_tile(B_pad, 8, tm_cap)
    tk = _pick_tile(K_pad, 128, tk_cap)
    tn = _pick_tile(H_pad, 128, tn_cap)

    # v7x has 2 TensorCores: make sure the "parallel" axes expose >= 2 blocks
    # so both cores stream weights (costs one cheap extra step on v5e/v6e).
    if (B_pad // tm) * (H_pad // tn) < 2 and H_pad >= 256:
        for t in range(tn - 128, 127, -128):
            if H_pad % t == 0:
                tn = t
                break

    # Only the (small) activations are padded per call; weights/bias are
    # already lane-aligned from prep.
    lhs_p = jnp.pad(lhs, ((0, B_pad - B), (0, K_pad - K)))

    n_i, n_j, n_k = B_pad // tm, H_pad // tn, K_pad // tk

    lhs_item = lhs_p.dtype.itemsize
    w_item = w_p.dtype.itemsize
    out_item = jnp.dtype(out_dtype).itemsize
    cost = pl.CostEstimate(
        flops=2 * B_pad * K_pad * H_pad,
        transcendentals=B_pad * H_pad if nonlinearity == "tanh" else 0,
        bytes_accessed=(
            n_j * B_pad * K_pad * lhs_item      # lhs re-streamed per j block
            + n_i * K_pad * H_pad * w_item      # weight re-streamed per i block
            + n_i * H_pad * 4                   # bias
            + B_pad * H_pad * out_item
        ),
    )

    if n_k == 1:
        kernel = functools.partial(_rnncell_single_k_kernel,
                                   nonlinearity=nonlinearity)
        grid = (n_i, n_j)
        in_specs = [
            pl.BlockSpec((tm, tk), lambda i, j: (i, 0)),   # [x | hx]
            pl.BlockSpec((tk, tn), lambda i, j: (0, j)),   # fused weight
            pl.BlockSpec((1, tn), lambda i, j: (0, j)),    # fused bias
        ]
        out_specs = pl.BlockSpec((tm, tn), lambda i, j: (i, j))
        scratch_shapes = []
        dim_sem = ("parallel", "parallel")
    else:
        kernel = functools.partial(_rnncell_acc_kernel,
                                   nonlinearity=nonlinearity)
        grid = (n_i, n_j, n_k)
        in_specs = [
            pl.BlockSpec((tm, tk), lambda i, j, k: (i, k)),
            pl.BlockSpec((tk, tn), lambda i, j, k: (k, j)),
            pl.BlockSpec((1, tn), lambda i, j, k: (0, j)),
        ]
        out_specs = pl.BlockSpec((tm, tn), lambda i, j, k: (i, j))
        scratch_shapes = [pltpu.VMEM((tm, tn), jnp.float32)]
        dim_sem = ("parallel", "parallel", "arbitrary")

    out = pl.pallas_call(
        kernel,
        out_shape=jax.ShapeDtypeStruct((B_pad, H_pad), out_dtype),
        grid_spec=pltpu.PrefetchScalarGridSpec(
            num_scalar_prefetch=0,
            grid=grid,
            in_specs=in_specs,
            out_specs=out_specs,
            scratch_shapes=scratch_shapes,
        ),
        compiler_params=pltpu.CompilerParams(dimension_semantics=dim_sem),
        cost_estimate=cost,
    )(lhs_p, w_p, b_p)

    if B_pad == B and H_pad == hidden_size:
        return out
    return out[:B, :hidden_size]


# --------------------------------------------------------------------------
# Parameter prep + apply (PyTorch RNNCell semantics)
# --------------------------------------------------------------------------

def prepare_rnn_cell_params(w_x2h, b_x2h, w_h2h, b_h2h,
                            compute_dtype=jnp.bfloat16):
    """One-time parameter prep (run once, reuse across apply calls).

    w_x2h: (H, I) PyTorch nn.Linear layout, w_h2h: (H, H), biases: (H,) or None.
    Transposes + concats the weights into one fused MXU operand, folds the two
    biases, casts to the compute dtype and pre-pads everything to lane-aligned
    (128-multiple) shapes so the apply path never rewrites the weights in HBM.
    """
    H, I = w_x2h.shape
    K = I + H
    K_pad = _round_up(K, 128)
    I_pad = _round_up(I, 128)
    H_pad = _round_up(H, 128)

    if b_x2h is None:
        b_x2h = jnp.zeros((H,), jnp.float32)
    if b_h2h is None:
        b_h2h = jnp.zeros((H,), jnp.float32)

    w_fused = jnp.concatenate(
        [jnp.transpose(w_x2h), jnp.transpose(w_h2h)], axis=0
    ).astype(compute_dtype)                                      # (I+H, H)
    w_fused = jnp.pad(w_fused, ((0, K_pad - K), (0, H_pad - H)))

    w_x_only = jnp.pad(jnp.transpose(w_x2h).astype(compute_dtype),
                       ((0, I_pad - I), (0, H_pad - H)))         # hx=None path

    b_fused = (b_x2h.astype(jnp.float32)
               + b_h2h.astype(jnp.float32)).reshape(1, H)
    b_fused = jnp.pad(b_fused, ((0, 0), (0, H_pad - H)))

    return {
        "w_fused": w_fused,          # (K_pad, H_pad), compute dtype
        "w_x": w_x_only,             # (I_pad, H_pad), compute dtype
        "b": b_fused,                # (1, H_pad), f32
        "input_size": I,
        "hidden_size": H,
        "compute_dtype": compute_dtype,
    }


def rnn_cell_apply(params, x, hx=None, nonlinearity="tanh",
                   tk_cap=1024, tn_cap=512):
    if nonlinearity not in ("tanh", "relu"):
        raise ValueError("Invalid nonlinearity selected for RNN.")
    out_dtype = x.dtype
    cdt = params["compute_dtype"]
    H = params["hidden_size"]
    if hx is None:
        # Zero initial state: hx @ W_h2h^T == 0, skip the h2h matmul entirely
        # (the fused bias still contains b_h2h, matching PyTorch semantics).
        lhs = x.astype(cdt)
        w = params["w_x"]
    else:
        # TODO(synk): for large-batch / in-kernel-sequence variants, pass x and
        # hx as separate kernel inputs instead of materializing this concat.
        lhs = jnp.concatenate([x, hx], axis=1).astype(cdt)
        w = params["w_fused"]
    return _fused_linear_act(
        lhs, w, params["b"], hidden_size=H, nonlinearity=nonlinearity,
        out_dtype=out_dtype, tk_cap=tk_cap, tn_cap=tn_cap)


def rnn_cell(x, w_x2h, b_x2h, w_h2h, b_h2h, hx=None, nonlinearity="tanh",
             compute_dtype=jnp.bfloat16):
    """Convenience wrapper (prep + apply). Prefer prepare_* + apply for reuse."""
    params = prepare_rnn_cell_params(w_x2h, b_x2h, w_h2h, b_h2h, compute_dtype)
    return rnn_cell_apply(params, x, hx=hx, nonlinearity=nonlinearity)


if __name__ == "__main__":
    # Deterministic setup mirroring reset_parameters: U(-std, std), std=1/sqrt(H).
    batch, input_size, hidden_size = 2, 16, 32
    std = 1.0 / math.sqrt(hidden_size)

    key = jax.random.PRNGKey(0)
    k_x, k_h, k_wx, k_bx, k_wh, k_bh = jax.random.split(key, 6)

    x = jax.random.normal(k_x, (batch, input_size), dtype=jnp.float32)
    hx = jax.random.normal(k_h, (batch, hidden_size), dtype=jnp.float32)
    w_x2h = jax.random.uniform(k_wx, (hidden_size, input_size), minval=-std,
                               maxval=std, dtype=jnp.float32)
    b_x2h = jax.random.uniform(k_bx, (hidden_size,), minval=-std, maxval=std,
                               dtype=jnp.float32)
    w_h2h = jax.random.uniform(k_wh, (hidden_size, hidden_size), minval=-std,
                               maxval=std, dtype=jnp.float32)
    b_h2h = jax.random.uniform(k_bh, (hidden_size,), minval=-std, maxval=std,
                               dtype=jnp.float32)

    # Pure-JAX references.
    pre = x @ w_x2h.T + b_x2h + hx @ w_h2h.T + b_h2h
    ref_tanh = jnp.tanh(pre)
    ref_relu = jnp.maximum(pre, 0.0)
    ref_none = jnp.tanh(x @ w_x2h.T + b_x2h + b_h2h)

    # Default path: bf16 MXU operands, f32 accumulate + f32 bias/act epilogue.
    params = prepare_rnn_cell_params(w_x2h, b_x2h, w_h2h, b_h2h)
    hy = jax.block_until_ready(rnn_cell_apply(params, x, hx=hx))
    hy_relu = jax.block_until_ready(
        rnn_cell_apply(params, x, hx=hx, nonlinearity="relu"))
    hy_none = jax.block_until_ready(rnn_cell_apply(params, x, hx=None))
    assert hy.shape == (batch, hidden_size)
    assert jnp.allclose(hy, ref_tanh, atol=2e-2), "mismatch (tanh, bf16)"
    assert jnp.allclose(hy_relu, ref_relu, atol=2e-2), "mismatch (relu, bf16)"
    assert jnp.allclose(hy_none, ref_none, atol=2e-2), "mismatch (hx=None, bf16)"

    # Exact-semantics f32 weight path.
    params_f32 = prepare_rnn_cell_params(w_x2h, b_x2h, w_h2h, b_h2h,
                                         compute_dtype=jnp.float32)
    hy_f32 = jax.block_until_ready(rnn_cell_apply(params_f32, x, hx=hx))
    hy_relu_f32 = jax.block_until_ready(
        rnn_cell_apply(params_f32, x, hx=hx, nonlinearity="relu"))
    assert jnp.allclose(hy_f32, ref_tanh, atol=1e-5), "mismatch (tanh, f32)"
    assert jnp.allclose(hy_relu_f32, ref_relu, atol=1e-5), "mismatch (relu, f32)"

    # Larger shape: exercises the multi-j grid (TC split) and, via a reduced
    # tk cap, the K-accumulation kernel.  K=584 -> K_pad=640 (no 2.3x overpad).
    B2, I2, H2 = 16, 200, 384
    std2 = 1.0 / math.sqrt(H2)
    k2 = jax.random.split(jax.random.PRNGKey(1), 6)
    x2 = jax.random.normal(k2[0], (B2, I2), dtype=jnp.float32)
    hx2 = jax.random.normal(k2[1], (B2, H2), dtype=jnp.float32)
    wx2 = jax.random.uniform(k2[2], (H2, I2), minval=-std2, maxval=std2)
    bx2 = jax.random.uniform(k2[3], (H2,), minval=-std2, maxval=std2)
    wh2 = jax.random.uniform(k2[4], (H2, H2), minval=-std2, maxval=std2)
    bh2 = jax.random.uniform(k2[5], (H2,), minval=-std2, maxval=std2)
    ref2 = jnp.tanh(x2 @ wx2.T + bx2 + hx2 @ wh2.T + bh2)

    params2 = prepare_rnn_cell_params(wx2, bx2, wh2, bh2,
                                      compute_dtype=jnp.float32)
    hy2 = jax.block_until_ready(rnn_cell_apply(params2, x2, hx=hx2))
    hy2_acc = jax.block_until_ready(
        rnn_cell_apply(params2, x2, hx=hx2, tk_cap=256))   # forces K accumulation
    assert jnp.allclose(hy2, ref2, atol=1e-4), "mismatch (tiled grid, f32)"
    assert jnp.allclose(hy2_acc, ref2, atol=1e-4), "mismatch (K-accum grid, f32)"

    print("KERNEL_OK")
</pallas_src>

<mosaic_0001>
module attributes {stable_mosaic.version = 11 : i64} {
  func.func @_rnncell_single_k_kernel(%arg0: i32, %arg1: i32, %arg2: memref<8x128xbf16, #tpu.memory_space<vmem>>, %arg3: memref<128x128xbf16, #tpu.memory_space<vmem>>, %arg4: memref<1x128xf32, #tpu.memory_space<vmem>>, %arg5: memref<8x128xf32, #tpu.memory_space<vmem>>) attributes {dimension_semantics = [#tpu.dimension_semantics<parallel>, #tpu.dimension_semantics<parallel>], iteration_bounds = array<i64: 1, 1>, scalar_prefetch = 0 : i64, scratch_operands = 0 : i64, tpu.core_type = #tpu.core_type<tc>, window_params = [{transform_indices = @transform_0, window_bounds = array<i64: 8, 128>}, {transform_indices = @transform_1, window_bounds = array<i64: 128, 128>}, {transform_indices = @transform_2, window_bounds = array<i64: 1, 128>}, {transform_indices = @transform_3, window_bounds = array<i64: 8, 128>}]} {
    %c0 = arith.constant 0 : index
    %c0_0 = arith.constant 0 : index
    %0 = vector.load %arg2[%c0, %c0_0] : memref<8x128xbf16, #tpu.memory_space<vmem>>, vector<8x128xbf16>
    %c0_1 = arith.constant 0 : index
    %c0_2 = arith.constant 0 : index
    %1 = vector.load %arg3[%c0_1, %c0_2] : memref<128x128xbf16, #tpu.memory_space<vmem>>, vector<128x128xbf16>
    %cst = arith.constant dense<0.000000e+00> : vector<8x128xf32>
    %2 = tpu.matmul %0, %1, %cst {dimension_numbers = #tpu.dot_dimension_numbers<[1], [0], [0], [1], [0, 0, 1, 1], [], []>} : vector<8x128xbf16>, vector<128x128xbf16>, vector<8x128xf32> -> vector<8x128xf32>
    %c0_3 = arith.constant 0 : index
    %c0_4 = arith.constant 0 : index
    %3 = vector.load %arg4[%c0_3, %c0_4] : memref<1x128xf32, #tpu.memory_space<vmem>>, vector<1x128xf32>
    %4 = vector.broadcast %3 : vector<1x128xf32> to vector<8x128xf32>
    %5 = arith.addf %2, %4 : vector<8x128xf32>
    %6 = math.tanh %5 : vector<8x128xf32>
    %c0_5 = arith.constant 0 : index
    %c0_6 = arith.constant 0 : index
    %7 = vector.load %arg5[%c0_5, %c0_6] : memref<8x128xf32, #tpu.memory_space<vmem>>, vector<8x128xf32>
    tpu.vector_store %arg5[%c0_5, %c0_6], %6 {strides = array<i32>} : memref<8x128xf32, #tpu.memory_space<vmem>>, vector<8x128xf32>,
    return
  }
  func.func @transform_0(%arg0: i32, %arg1: i32) -> (i32, i32) {
    %c0_i32 = arith.constant 0 : i32
    %c0_i32_0 = arith.constant 0 : i32
    return %arg0, %c0_i32 : i32, i32
  }
  func.func @transform_1(%arg0: i32, %arg1: i32) -> (i32, i32) {
    %c0_i32 = arith.constant 0 : i32
    %c0_i32_0 = arith.constant 0 : i32
    return %c0_i32, %arg1 : i32, i32
  }
  func.func @transform_2(%arg0: i32, %arg1: i32) -> (i32, i32) {
    %c0_i32 = arith.constant 0 : i32
    %c0_i32_0 = arith.constant 0 : i32
    return %c0_i32, %arg1 : i32, i32
  }
  func.func @transform_3(%arg0: i32, %arg1: i32) -> (i32, i32) {
    %c0_i32 = arith.constant 0 : i32
    return %arg0, %arg1 : i32, i32
  }
}

</mosaic_0001>

<bundles_post_ra>
// kernel: tpu_custom_call.1
= control target key start
LH: loop header
LB: loop body
LE: loop exit
PB: predicated region body
PF: predicated region fallthrough
CT: control target
= control target key end

     0   :  { %8 = vsyncpa [#allocation3], 0  ;;  %s372_s0 = inlined_call_operand.hbm [shape: bf16[8,128], index: 0, kind: input, shape index: {}]   ;;  %s373_s1 = inlined_call_operand.hbm [shape: bf16[128,128], index: 1, kind: input, shape index: {}]   ;;  %s374_s2 = inlined_call_operand.vmem [shape: f32[1,128], index: 2, kind: input, shape index: {}]   ;;  %s375_s3 = inlined_call_operand.hbm [shape: f32[8,128], index: 3, kind: output, shape index: {}]  }
   0x1   :  { %9 = vsyncpa [#allocation6], 0 }
   0x2   :  { %10 = vsyncpa [#allocation4], 0  ;;  %s299_s12 = smov [#allocation2]   ;;  %s300_s14 = smov [#allocation5]  }
   0x3   :  { %s17_s13 = sshll.u32 %s299_s12, 4  ;;  %s26_s15 = sshll.u32 %s300_s14, 4  ;;  %s18_s13 = int_to_ptr.vmem [resolvable:$true] %s17_s13  ;;  %s326_s15 = int_to_ptr.vmem [resolvable:$true] %s26_s15 }
   0x4   :  { %s227_s18 = scalar_lea.hbm %s372_s0, 64 }
   0x5   :  { %p228_p0 = scmp.ne.s32.totalorder %s372_s0, %s227_s18  ;;  %p231_p1 = scmp.lt.u32.totalorder %s227_s18, %s372_s0 }
   0x7   :  { %p233_p2 = pnand %p231_p1, %p228_p0 }
   0x9   :  { %236 = shalt.err (!%p233_p2)
}
   0xa   :  { %s237_s23 = scalar_lea.vmem %s18_s13, 64  ;;  %p242_p4 = scmp.lt.s32.totalorder %s18_s13, %s18_s13 }
   0xb   :  { %p238_p3 = scmp.ne.s32.totalorder %s18_s13, %s237_s23  ;;  %p243_p5 = scmp.lt.s32.totalorder %s237_s23, %s237_s23 }
   0xd   :  { %p244_p6 = por %p243_p5, %p242_p4 }
   0xf   :  { %p245_p7 = pnand %p244_p6, %p238_p3 }
  0x11   :  { %248 = shalt.err (!%p245_p7)
}
  0x12   :  { %20 = dma.hbm_to_vmem [thread:$0]  %s372_s0, 64, %s18_s13, [#allocation3]  }
  0x13   :  { %s249_s28 = scalar_lea.hbm %s373_s1, 1024 }
  0x14   :  { %p250_p8 = scmp.ne.s32.totalorder %s373_s1, %s249_s28  ;;  %p253_p9 = scmp.lt.u32.totalorder %s249_s28, %s373_s1 }
  0x16   :  { %p255_p10 = pnand %p253_p9, %p250_p8 }
  0x18   :  { %258 = shalt.err (!%p255_p10)
}
  0x19   :  { %s259_s6 = scalar_lea.vmem %s326_s15, 1024  ;;  %p264_p12 = scmp.lt.s32.totalorder %s326_s15, %s326_s15 }
  0x1a   :  { %p260_p11 = scmp.ne.s32.totalorder %s326_s15, %s259_s6  ;;  %p265_p13 = scmp.lt.s32.totalorder %s259_s6, %s259_s6 }
  0x1c   :  { %p266_p0 = por %p265_p13, %p264_p12 }
  0x1e   :  { %p267_p1 = pnand %p266_p0, %p260_p11 }
  0x20   :  { %270 = shalt.err (!%p267_p1)
}
  0x21   :  { %s301_s0 = smov 64   ;;  %s302_s7 = smov 4  }
  0x22   :  { %32 = dma.hbm_to_vmem [thread:$0]  %s373_s1, 1024, %s326_s15, [#allocation6], %s301_s0, %s301_s0, %s302_s7  }
  0x23   :  { %293 = dma.done.wait [#allocation3], 64  }
  0x24   :  { %294 = vsyncadd [#allocation3], 4294967232 }
  0x25   :  { %295 = dma.done.wait [#allocation6], 1024  }
  0x26   :  { %296 = vsyncadd [#allocation6], 4294966272  ;;  %v303_v0 = vmov 0.0   ;;  %vm304_vm0 = vmmov 0   ;;  %v217_v1 = vld [vmem:[#allocation5] sm:$0xff]   ;;  %v218_v2 = vld [vmem:[#allocation5 + $0x8] sm:$0xff]  }
  0x27   :  { %190 = vmatprep.subr.bf16.mxu0 %v303_v0  ;;  %206 = vmatprep.mubr.msk.bf16.mxu0 %vm304_vm0, %v303_v0  ;;  %v219_v3 = vld [vmem:[#allocation5 + $0x10] sm:$0xff]   ;;  %v220_v4 = vld [vmem:[#allocation5 + $0x18] sm:$0xff]   ;;  %v221_v5 = vld [vmem:[#allocation5 + $0x20] sm:$0xff]   ;;  %s305_s11 = smov [#allocation7]  }
  0x28   :  { %191 = vmatpush3.bf16.msra.mxu0 %v217_v1  ;;  %v222_v6 = vld [vmem:[#allocation5 + $0x28] sm:$0xff]   ;;  %v223_v7 = vld [vmem:[#allocation5 + $0x30] sm:$0xff]   ;;  %v224_v8 = vld [vmem:[#allocation5 + $0x38] sm:$0xff]   ;;  %s162_s12 = sshll.u32 %s305_s11, 4  ;;  %s163_s12 = int_to_ptr.vmem [resolvable:$true] %s162_s12 }
  0x29   :  { %192 = vmatprep.subr.bf16.mxu0 %v303_v0  ;;  %v42_v9 = vld [vmem:[#allocation2] sm:$0xf]  ;;  %s271_s13 = scalar_lea.vmem %s163_s12, 128  ;;  %p276_p3 = scmp.lt.s32.totalorder %s163_s12, %s163_s12 }
  0x2a   :  { %v172_v10 = vld [vmem:[%s374_s2] ss:$0 sm:$0xff]  ;;  %p272_p2 = scmp.ne.s32.totalorder %s163_s12, %s271_s13  ;;  %p277_p4 = scmp.lt.s32.totalorder %s271_s13, %s271_s13 }
  0x2c   :  { %193 = vmatpush3.bf16.msra.mxu0 %v218_v2  ;;  %p278_p5 = por %p277_p4, %p276_p3 }
  0x2d   :  { %194 = vmatprep.subr.bf16.mxu0 %v303_v0 }
  0x2e   :  { %p279_p6 = pnand %p278_p5, %p272_p2 }
  0x30   :  { %195 = vmatpush3.bf16.msra.mxu0 %v219_v3 }
  0x31   :  { %196 = vmatprep.subr.bf16.mxu0 %v303_v0 }
  0x34   :  { %197 = vmatpush3.bf16.msra.mxu0 %v220_v4 }
  0x35   :  { %198 = vmatprep.subr.bf16.mxu0 %v303_v0 }
  0x38   :  { %199 = vmatpush3.bf16.msra.mxu0 %v221_v5 }
  0x39   :  { %200 = vmatprep.subr.bf16.mxu0 %v303_v0 }
  0x3c   :  { %201 = vmatpush3.bf16.msra.mxu0 %v222_v6 }
  0x3d   :  { %202 = vmatprep.subr.bf16.mxu0 %v303_v0 }
  0x40   :  { %203 = vmatpush3.bf16.msra.mxu0 %v223_v7 }
  0x41   :  { %204 = vmatprep.subr.bf16.mxu0 %v303_v0 }
  0x44   :  { %205 = vmatpush3.bf16.msra.mxu0 %v224_v8 }
  0x47   :  { %207 = vmatmul.mubr.bf16.vlgmr.msra.gmra.mrb[0].mxu0 %v42_v9 }
 0x11a   :  { %v148_v11 = vpop.f32.mrb[0].mxu0 }
 0x11b   :  { %v149_v12 = vadd.f32 %v172_v10, %v148_v11  ;;  %v208_v13 = vpop.f32.mrb[1].mxu0 }
 0x11c   :  { %v151_v14 = vpop.f32.mrb[2].mxu0 }
 0x11d   :  { %225 = vtanh.f32 %v149_v12  ;;  %v209_v15 = vpop.f32.mrb[3].mxu0 }
 0x127   :  { %v226_v16 = vpop.eup %225 }
 0x128   :  { %155 = vst [vmem:[#allocation7] sm:$0xff] %v226_v16 }
 0x129   :  { %282 = shalt.err (!%p279_p6)
}
 0x12a   :  { %s283_s15 = scalar_lea.hbm %s375_s3, 128 }
 0x12b   :  { %p284_p7 = scmp.ne.s32.totalorder %s375_s3, %s283_s15  ;;  %p287_p8 = scmp.lt.u32.totalorder %s283_s15, %s375_s3 }
 0x12d   :  { %p289_p9 = pnand %p287_p8, %p284_p7 }
 0x12f   :  { %292 = shalt.err (!%p289_p9)
}
 0x130   :  { %165 = dma.vmem_to_hbm [thread:$0]  %s163_s12, 128, %s375_s3, [#allocation4]  }
 0x131   :  { %297 = dma.done.wait [#allocation4], 128  }
 0x132   :  { %298 = vsyncadd [#allocation4], 4294967168 }
 0x133   :  { %169 = vsyncpa [#allocation3], 1 }
 0x134   :  { %170 = vsyncpa [#allocation6], 1 }
 0x135   :  { %171 = vsyncpa [#allocation4], 1 }

</bundles_post_ra>
